<compile_context>
chip_gen: v7x
topology: tpu7x:2x2x1
jax: 0.10.0
libtpu: 0.0.40
codegen_flags: <defaults>
</compile_context>

<pallas_src>
import functools
import math

import jax
import jax.numpy as jnp
from jax import lax
from jax.experimental import pallas as pl
from jax.experimental.pallas import tpu as pltpu

BN_EPS = 1e-5
LANES = 128
SUBLANES = 8
DEF_VMEM_LIMIT = 32 * 1024 * 1024  # safe on v7x; raise to 64-96 MiB on v5e/v6e


def _round_up(x, m):
    return (x + m - 1) // m * m


# ---------------------------------------------------------------------------
# Kernels
# ---------------------------------------------------------------------------
def _maxpool_kernel(x_ref, o_ref):
    # x_ref: (tr, 2, W2, 2*C) -- axis 1 = row parity, lane axis packs
    # (column parity, channel).  o_ref: (tr, W2, C).
    c = o_ref.shape[-1]
    v = x_ref[...]
    tl = v[:, 0, :, :c]
    tr = v[:, 0, :, c:]
    bl = v[:, 1, :, :c]
    br = v[:, 1, :, c:]
    o_ref[...] = jnp.maximum(jnp.maximum(tl, tr), jnp.maximum(bl, br))


def _convK_stats_kernel(x_ref, w_ref, y_ref, sum_ref, sq_ref):
    # Small-Cin fast path: x_ref (TM, Kp) packed im2col, w_ref (Kp, Cout_blk).
    # One MXU matmul; the f32 accumulator is reused for the BN partial sums.
    acc = jnp.dot(x_ref[...], w_ref[...], preferred_element_type=jnp.float32)
    y_ref[...] = acc.astype(y_ref.dtype)
    s = jnp.sum(acc, axis=0, keepdims=True)
    sq = jnp.sum(acc * acc, axis=0, keepdims=True)
    sum_ref[...] = jnp.broadcast_to(s, sum_ref.shape)
    sq_ref[...] = jnp.broadcast_to(sq, sq_ref.shape)


def _conv9_stats_kernel(v0_ref, v1_ref, v2_ref, w_ref, y_ref, sum_ref, sq_ref,
                        *, width):
    # General path: three dy-shifted (TM, Cin_p) views; the dx=-1/+1 taps are
    # built in-VMEM by a one-row sublane shift (concat of static slices, with
    # certain semantics; pltpu.roll is the XLU-cheaper alternative) plus a mask
    # that re-creates the conv's zero padding at w==0 / w==W-1.  The tile size
    # is a multiple of `width`, so block boundaries coincide with masked rows.
    tm, cin_p = v0_ref.shape
    w_pos = lax.broadcasted_iota(jnp.int32, (tm, 1), 0) % width
    not_first = w_pos != 0            # left tap valid only when w > 0
    not_last = w_pos != (width - 1)   # right tap valid only when w < W-1

    acc = None
    for dy, v_ref in enumerate((v0_ref, v1_ref, v2_ref)):
        v = v_ref[...]
        zrow = jnp.zeros((1, cin_p), v.dtype)
        left = jnp.where(not_first,
                         jnp.concatenate([zrow, v[:-1, :]], axis=0),
                         jnp.zeros_like(v))          # tap at (h+dy-1, w-1)
        right = jnp.where(not_last,
                          jnp.concatenate([v[1:, :], zrow], axis=0),
                          jnp.zeros_like(v))         # tap at (h+dy-1, w+1)
        for dx, tap in enumerate((left, v, right)):
            part = jnp.dot(tap, w_ref[3 * dy + dx],
                           preferred_element_type=jnp.float32)
            acc = part if acc is None else acc + part

    y_ref[...] = acc.astype(y_ref.dtype)
    s = jnp.sum(acc, axis=0, keepdims=True)
    sq = jnp.sum(acc * acc, axis=0, keepdims=True)
    sum_ref[...] = jnp.broadcast_to(s, sum_ref.shape)
    sq_ref[...] = jnp.broadcast_to(sq, sq_ref.shape)


def _bn_relu_kernel(y_ref, scale_ref, shift_ref, o_ref):
    # Final-layer BN apply: y * scale + shift, ReLU (scale/shift f32).
    y = y_ref[...].astype(jnp.float32)
    o_ref[...] = jnp.maximum(y * scale_ref[...] + shift_ref[...],
                             0.0).astype(o_ref.dtype)


# ---------------------------------------------------------------------------
# Tile sizing helpers
# ---------------------------------------------------------------------------
def _conv_tm(m, w_block_bytes, row_bytes, quantum, vmem_limit, block_m):
    """Rows per conv tile: fill ~half the VMEM budget (double-buffered)."""
    if block_m is None:
        budget = max(vmem_limit // 2 - 2 * w_block_bytes,
                     4 * row_bytes * quantum)
        tm = (budget // (2 * row_bytes)) // quantum * quantum
        cap = max(quantum, (2048 // quantum) * quantum)
        tm = max(quantum, min(tm, cap))
    else:
        tm = _round_up(block_m, quantum)
    return min(tm, _round_up(m, quantum))


# ---------------------------------------------------------------------------
# Wrappers
# ---------------------------------------------------------------------------
def maxpool2x2(x, *, block_r=None, vmem_limit=DEF_VMEM_LIMIT):
    """x: (N, H, W, Cp) -> (N, H//2, W//2, Cp); channels already lane-padded."""
    N, H, W, Cp = x.shape
    H2, W2 = H // 2, W // 2
    R = N * H2
    itm = x.dtype.itemsize

    # Free reshape: rows = output rows; lane axis packs (col parity, channel).
    xr = x.reshape(R, 2, W2, 2 * Cp)

    row_bytes = (2 * W2 * 2 * Cp + W2 * Cp) * itm
    if block_r is None:
        tr = max(1, min(R, (vmem_limit // 4) // row_bytes))
    else:
        tr = max(1, min(R, block_r))
    Rp = _round_up(R, tr)
    if Rp != R:
        xr = jnp.pad(xr, ((0, Rp - R), (0, 0), (0, 0), (0, 0)))

    out = pl.pallas_call(
        _maxpool_kernel,
        out_shape=jax.ShapeDtypeStruct((Rp, W2, Cp), x.dtype),
        grid=(Rp // tr,),
        in_specs=[pl.BlockSpec((tr, 2, W2, 2 * Cp), lambda i: (i, 0, 0, 0))],
        out_specs=pl.BlockSpec((tr, W2, Cp), lambda i: (i, 0, 0)),
        compiler_params=pltpu.CompilerParams(
            dimension_semantics=("parallel",), vmem_limit_bytes=vmem_limit),
        cost_estimate=pl.CostEstimate(
            flops=int(3 * Rp * W2 * Cp), transcendentals=0,
            bytes_accessed=int(Rp * W2 * Cp * 5 * itm)),
    )(xr)
    return out[:R].reshape(N, H2, W2, Cp)


def conv3x3_stats(h, w_oihw, gamma, beta, *, compute_dtype=jnp.bfloat16,
                  block_m=None, vmem_limit=DEF_VMEM_LIMIT):
    """3x3 SAME conv (no bias) + per-channel BatchNorm batch statistics.

    h: (N, H, W, Ch) activation with Ch >= Cin channels (extra channels are
    zero padding).  Returns (y_raw, scale, shift, tm) where y_raw is the
    (Mp, Cout_p) pre-BN conv output in compute_dtype and scale/shift fold the
    training-mode batch statistics with gamma/beta in f32.
    """
    N, H, W, Ch = h.shape
    Cout, Cin = int(w_oihw.shape[0]), int(w_oihw.shape[1])
    assert Ch >= Cin
    Cout_p = _round_up(Cout, LANES)
    cout_blk = 2 * LANES if Cout_p % (2 * LANES) == 0 else LANES
    grid_j = Cout_p // cout_blk
    M = N * H * W
    itm = jnp.dtype(compute_dtype).itemsize
    small_k = 9 * Cin <= LANES

    # OIHW -> (3, 3, Cin, Cout): [dy, dx, c, o].
    w9 = jnp.transpose(w_oihw, (2, 3, 1, 0)).reshape(9, Cin, Cout)

    if small_k:
        Kp = LANES
        quantum = SUBLANES
        row_in_bytes = Kp * itm
        w_block_bytes = Kp * cout_blk * itm
    else:
        Cin_p = _round_up(Cin, LANES)
        quantum = W * SUBLANES // math.gcd(W, SUBLANES)   # tm % W == 0, % 8 == 0
        row_in_bytes = 3 * Cin_p * itm
        w_block_bytes = 9 * Cin_p * cout_blk * itm

    row_bytes = row_in_bytes + cout_blk * itm
    tm = _conv_tm(M, w_block_bytes, row_bytes, quantum, vmem_limit, block_m)
    Mp = _round_up(M, tm)
    grid_m = Mp // tm

    if small_k:
        # K = 9*Cin packed into a single 128-lane contraction (review item:
        # small-Cin fast path).  One (M, 128) im2col slab instead of 9 views.
        hc = h[..., :Cin].astype(compute_dtype)
        hp = jnp.pad(hc, ((0, 0), (1, 1), (1, 1), (0, 0)))
        cols = [hp[:, dy:dy + H, dx:dx + W, :]
                for dy in range(3) for dx in range(3)]
        x = jnp.concatenate(cols, axis=-1).reshape(M, 9 * Cin)
        x = jnp.pad(x, ((0, Mp - M), (0, Kp - 9 * Cin)))
        w_mat = w9.reshape(9 * Cin, Cout)
        w_mat = jnp.pad(w_mat, ((0, Kp - 9 * Cin), (0, Cout_p - Cout)))
        w_mat = w_mat.astype(compute_dtype)
        kernel = _convK_stats_kernel
        inputs = (x, w_mat)
        in_specs = [pl.BlockSpec((tm, Kp), lambda i, j: (i, 0)),
                    pl.BlockSpec((Kp, cout_blk), lambda i, j: (0, j))]
        flops = 2 * Mp * Kp * Cout_p
        in_bytes = Mp * Kp * itm * grid_j + Kp * Cout_p * itm * grid_m
    else:
        # General path: 3 dy-shifted views (3x input traffic, not 9x); dx taps
        # are produced inside the kernel.
        Cin_p = _round_up(Cin, LANES)
        hc = h.astype(compute_dtype)
        if Ch < Cin_p:
            hc = jnp.pad(hc, ((0, 0), (0, 0), (0, 0), (0, Cin_p - Ch)))
        elif Ch > Cin_p:
            hc = hc[..., :Cin_p]
        hph = jnp.pad(hc, ((0, 0), (1, 1), (0, 0), (0, 0)))   # pad H only
        views = []
        for dy in range(3):
            v = hph[:, dy:dy + H, :, :].reshape(M, Cin_p)
            views.append(jnp.pad(v, ((0, Mp - M), (0, 0))))
        w_mat = jnp.pad(w9, ((0, 0), (0, Cin_p - Cin), (0, Cout_p - Cout)))
        w_mat = w_mat.astype(compute_dtype)
        kernel = functools.partial(_conv9_stats_kernel, width=W)
        inputs = (*views, w_mat)
        in_specs = ([pl.BlockSpec((tm, Cin_p), lambda i, j: (i, 0))] * 3
                    + [pl.BlockSpec((9, Cin_p, cout_blk),
                                    lambda i, j: (0, 0, j))])
        flops = 2 * Mp * Cin_p * Cout_p * 9
        in_bytes = (3 * Mp * Cin_p * itm * grid_j
                    + 9 * Cin_p * Cout_p * itm * grid_m)

    y, psum, psq = pl.pallas_call(
        kernel,
        out_shape=(jax.ShapeDtypeStruct((Mp, Cout_p), compute_dtype),
                   jax.ShapeDtypeStruct((grid_m * SUBLANES, Cout_p),
                                        jnp.float32),
                   jax.ShapeDtypeStruct((grid_m * SUBLANES, Cout_p),
                                        jnp.float32)),
        grid=(grid_m, grid_j),
        in_specs=in_specs,
        out_specs=(pl.BlockSpec((tm, cout_blk), lambda i, j: (i, j)),
                   pl.BlockSpec((SUBLANES, cout_blk), lambda i, j: (i, j)),
                   pl.BlockSpec((SUBLANES, cout_blk), lambda i, j: (i, j))),
        compiler_params=pltpu.CompilerParams(
            dimension_semantics=("parallel", "parallel"),
            vmem_limit_bytes=vmem_limit),
        cost_estimate=pl.CostEstimate(
            flops=int(flops), transcendentals=0,
            bytes_accessed=int(in_bytes + Mp * Cout_p * itm
                               + 2 * grid_m * SUBLANES * Cout_p * 4)),
    )(*inputs)

    # Finalize global training-mode BatchNorm statistics (biased variance over
    # all N*H*W positions) and fold gamma/beta into scale/shift -- all in f32.
    # Padded Mp-M rows are exactly zero (conv has no bias), so dividing by M is
    # correct.
    # TODO(synk): E[x^2]-E[x]^2 in f32 can cancel for very large M; a shifted /
    # Welford accumulation would be more robust for production-sized layers.
    inv_m = 1.0 / float(M)
    mean = jnp.sum(psum, axis=0) * (inv_m / SUBLANES)
    ex2 = jnp.sum(psq, axis=0) * (inv_m / SUBLANES)
    var = jnp.maximum(ex2 - mean * mean, 0.0)
    g = jnp.pad(gamma.astype(jnp.float32), (0, Cout_p - Cout))
    b = jnp.pad(beta.astype(jnp.float32), (0, Cout_p - Cout))
    scale = g * lax.rsqrt(var + BN_EPS)
    shift = b - mean * scale
    return y, scale, shift, tm


def bn_relu_apply(y, scale, shift, *, tm, out_dtype=jnp.float32,
                  vmem_limit=DEF_VMEM_LIMIT):
    """Final-layer y * scale + shift, ReLU.  y: (Mp, Cp) raw conv output."""
    Mp, Cp = y.shape
    cout_blk = 2 * LANES if Cp % (2 * LANES) == 0 else LANES
    out = pl.pallas_call(
        _bn_relu_kernel,
        out_shape=jax.ShapeDtypeStruct((Mp, Cp), out_dtype),
        grid=(Mp // tm, Cp // cout_blk),
        in_specs=[pl.BlockSpec((tm, cout_blk), lambda i, j: (i, j)),
                  pl.BlockSpec((1, cout_blk), lambda i, j: (0, j)),
                  pl.BlockSpec((1, cout_blk), lambda i, j: (0, j))],
        out_specs=pl.BlockSpec((tm, cout_blk), lambda i, j: (i, j)),
        compiler_params=pltpu.CompilerParams(
            dimension_semantics=("parallel", "parallel"),
            vmem_limit_bytes=vmem_limit),
        cost_estimate=pl.CostEstimate(
            flops=int(2 * Mp * Cp), transcendentals=0,
            bytes_accessed=int(Mp * Cp * (y.dtype.itemsize
                                          + jnp.dtype(out_dtype).itemsize))),
    )(y, scale.reshape(1, Cp), shift.reshape(1, Cp))
    return out


def down_forward(x, w1, g1, b1, w2, g2, b2, *, compute_dtype=jnp.bfloat16,
                 block_m=None, block_r=None, vmem_limit=DEF_VMEM_LIMIT):
    """Down(in, out): MaxPool2d(2) -> (Conv3x3 -> BN -> ReLU) * 2.  x is NHWC.

    bf16 MXU inputs (f32 accumulation + f32 BN math) on all generations; pass
    compute_dtype=float32 only where bit accuracy matters.
    """
    # TODO(synk): eval-mode BatchNorm (running_mean / running_var tracking) is
    # not implemented; this matches the module's training-mode forward.
    N, H, W, Cin = x.shape
    assert H % 2 == 0 and W % 2 == 0
    Cmid, Cout = int(w1.shape[0]), int(w2.shape[0])
    H2, W2 = H // 2, W // 2
    M = N * H2 * W2

    # Lane-pad channels so the pooled lane axis (2*Cp) is 128-dense.
    cp_pool = _round_up(Cin, LANES)
    xp = x.astype(compute_dtype)
    if cp_pool != Cin:
        xp = jnp.pad(xp, ((0, 0), (0, 0), (0, 0), (0, cp_pool - Cin)))
    p = maxpool2x2(xp, block_r=block_r, vmem_limit=vmem_limit)

    # conv1 + BN1 statistics.
    y1, s1, sh1, _ = conv3x3_stats(p, w1, g1, b1, compute_dtype=compute_dtype,
                                   block_m=block_m, vmem_limit=vmem_limit)
    Cmid_p = _round_up(Cmid, LANES)

    # BN1 + ReLU fused into the construction of conv2's input: this elementwise
    # affine folds into the XLA fusion that builds conv2's im2col / views, so
    # the intermediate activation is not round-tripped through HBM by a
    # standalone BN-apply pass.  Padded channels stay exactly zero.
    h1 = jnp.maximum(y1[:M].astype(jnp.float32) * s1[None, :] + sh1[None, :],
                     0.0)
    h1 = h1.astype(compute_dtype).reshape(N, H2, W2, Cmid_p)

    # conv2 + BN2 statistics, then the final standalone BN+ReLU apply pass.
    y2, s2, sh2, tm2 = conv3x3_stats(h1, w2, g2, b2,
                                     compute_dtype=compute_dtype,
                                     block_m=block_m, vmem_limit=vmem_limit)
    out = bn_relu_apply(y2, s2, sh2, tm=tm2, out_dtype=jnp.float32,
                        vmem_limit=vmem_limit)
    Cout_p = _round_up(Cout, LANES)
    return out[:M].reshape(N, H2, W2, Cout_p)[..., :Cout]


# ---------------------------------------------------------------------------
# Pure-JAX reference (for correctness check)
# ---------------------------------------------------------------------------
def _ref_conv_bn_relu(h, w, g, b):
    y = lax.conv_general_dilated(
        h, w, window_strides=(1, 1), padding="SAME",
        dimension_numbers=("NHWC", "OIHW", "NHWC"))
    mean = jnp.mean(y, axis=(0, 1, 2), keepdims=True)
    var = jnp.mean((y - mean) ** 2, axis=(0, 1, 2), keepdims=True)
    yn = (y - mean) / jnp.sqrt(var + BN_EPS)
    return jax.nn.relu(yn * g.reshape(1, 1, 1, -1) + b.reshape(1, 1, 1, -1))


def ref_down(x, w1, g1, b1, w2, g2, b2):
    p = lax.reduce_window(x, -jnp.inf, lax.max,
                          (1, 2, 2, 1), (1, 2, 2, 1), "VALID")
    h = _ref_conv_bn_relu(p, w1, g1, b1)
    return _ref_conv_bn_relu(h, w2, g2, b2)


# ---------------------------------------------------------------------------
if __name__ == "__main__":
    key = jax.random.PRNGKey(0)

    def make_params(k, cin, cmid, cout):
        ks = jax.random.split(k, 6)
        w1 = 0.2 * jax.random.normal(ks[0], (cmid, cin, 3, 3), jnp.float32)
        w2 = 0.2 * jax.random.normal(ks[1], (cout, cmid, 3, 3), jnp.float32)
        g1 = 1.0 + 0.1 * jax.random.normal(ks[2], (cmid,), jnp.float32)
        b1 = 0.1 * jax.random.normal(ks[3], (cmid,), jnp.float32)
        g2 = 1.0 + 0.1 * jax.random.normal(ks[4], (cout,), jnp.float32)
        b2 = 0.1 * jax.random.normal(ks[5], (cout,), jnp.float32)
        return w1, g1, b1, w2, g2, b2

    down = jax.jit(down_forward,
                   static_argnames=("compute_dtype", "block_m", "block_r",
                                    "vmem_limit"))

    # --- Down(4, 8) on a (2, 4, 16, 16) NCHW input (PyTorch convention). ----
    N, Cin, H, W = 2, 4, 16, 16
    Cmid = Cout = 8
    k0, k1 = jax.random.split(key)
    x_nchw = jax.random.normal(k0, (N, Cin, H, W), jnp.float32)
    x = jnp.transpose(x_nchw, (0, 2, 3, 1))          # NCHW -> NHWC
    params = make_params(k1, Cin, Cmid, Cout)
    ref = ref_down(x, *params)

    # 1) default bf16 MXU path (small-Cin fast path: 9*Cin <= 128).
    out_bf = jax.block_until_ready(down(x, *params))
    assert out_bf.shape == (N, H // 2, W // 2, Cout), out_bf.shape
    err = float(jnp.max(jnp.abs(out_bf - ref)))
    assert err < 1e-1, f"bf16 small-K path: max abs err = {err}"

    # 2) f32 compute with tiny tiles: exercises the multi-tile M grid and the
    #    cross-tile BatchNorm statistics reduction.
    out_f32 = jax.block_until_ready(
        down(x, *params, compute_dtype=jnp.float32, block_m=32, block_r=4))
    err = float(jnp.max(jnp.abs(out_f32 - ref)))
    assert err < 2e-2, f"f32 small-K path: max abs err = {err}"

    # 3) general path (9*Cin > 128): Down(16, 16) on (1, 16, 16, 16); small
    #    row-block tiles so the in-kernel dx masking at block boundaries and
    #    the multi-tile stats reduction are exercised.
    N2, Cin2, H2s, W2s = 1, 16, 16, 16
    k2, k3 = jax.random.split(k1)
    x2 = jnp.transpose(
        jax.random.normal(k2, (N2, Cin2, H2s, W2s), jnp.float32), (0, 2, 3, 1))
    params2 = make_params(k3, Cin2, Cin2, Cin2)
    ref2 = ref_down(x2, *params2)
    out2 = jax.block_until_ready(
        down(x2, *params2, compute_dtype=jnp.float32, block_m=16))
    assert out2.shape == (N2, H2s // 2, W2s // 2, Cin2), out2.shape
    err = float(jnp.max(jnp.abs(out2 - ref2)))
    assert err < 2e-2, f"f32 general path: max abs err = {err}"

    print("KERNEL_OK")
</pallas_src>

<mosaic_0001>
module attributes {stable_mosaic.version = 11 : i64} {
  func.func @_maxpool_kernel(%arg0: i32, %arg1: memref<16x2x8x256xbf16, #tpu.memory_space<vmem>>, %arg2: memref<16x8x128xbf16, #tpu.memory_space<vmem>>) attributes {dimension_semantics = [#tpu.dimension_semantics<parallel>], iteration_bounds = array<i64: 1>, scalar_prefetch = 0 : i64, scratch_operands = 0 : i64, tpu.core_type = #tpu.core_type<tc>, window_params = [{transform_indices = @transform_0, window_bounds = array<i64: 16, 2, 8, 256>}, {transform_indices = @transform_1, window_bounds = array<i64: 16, 8, 128>}]} {
    %c0 = arith.constant 0 : index
    %c0_0 = arith.constant 0 : index
    %c0_1 = arith.constant 0 : index
    %c0_2 = arith.constant 0 : index
    %0 = vector.load %arg1[%c0, %c0_0, %c0_1, %c0_2] : memref<16x2x8x256xbf16, #tpu.memory_space<vmem>>, vector<16x2x8x256xbf16>
    %1 = vector.extract_strided_slice %0 {offsets = [0, 0, 0, 0], sizes = [16, 1, 8, 128], strides = [1, 1, 1, 1]} : vector<16x2x8x256xbf16> to vector<16x1x8x128xbf16>
    %2 = vector.shape_cast %1 : vector<16x1x8x128xbf16> to vector<16x8x128xbf16>
    %3 = vector.extract_strided_slice %0 {offsets = [0, 0, 0, 128], sizes = [16, 1, 8, 128], strides = [1, 1, 1, 1]} : vector<16x2x8x256xbf16> to vector<16x1x8x128xbf16>
    %4 = vector.shape_cast %3 : vector<16x1x8x128xbf16> to vector<16x8x128xbf16>
    %5 = vector.extract_strided_slice %0 {offsets = [0, 1, 0, 0], sizes = [16, 1, 8, 128], strides = [1, 1, 1, 1]} : vector<16x2x8x256xbf16> to vector<16x1x8x128xbf16>
    %6 = vector.shape_cast %5 : vector<16x1x8x128xbf16> to vector<16x8x128xbf16>
    %7 = vector.extract_strided_slice %0 {offsets = [0, 1, 0, 128], sizes = [16, 1, 8, 128], strides = [1, 1, 1, 1]} : vector<16x2x8x256xbf16> to vector<16x1x8x128xbf16>
    %8 = vector.shape_cast %7 : vector<16x1x8x128xbf16> to vector<16x8x128xbf16>
    %9 = arith.maximumf %2, %4 : vector<16x8x128xbf16>
    %10 = arith.maximumf %6, %8 : vector<16x8x128xbf16>
    %11 = arith.maximumf %9, %10 : vector<16x8x128xbf16>
    %c0_3 = arith.constant 0 : index
    %c0_4 = arith.constant 0 : index
    %c0_5 = arith.constant 0 : index
    %12 = vector.load %arg2[%c0_3, %c0_4, %c0_5] : memref<16x8x128xbf16, #tpu.memory_space<vmem>>, vector<16x8x128xbf16>
    tpu.vector_store %arg2[%c0_3, %c0_4, %c0_5], %11 {strides = array<i32>} : memref<16x8x128xbf16, #tpu.memory_space<vmem>>, vector<16x8x128xbf16>,
    return
  }
  func.func @transform_0(%arg0: i32) -> (i32, i32, i32, i32) {
    %c0_i32 = arith.constant 0 : i32
    %c0_i32_0 = arith.constant 0 : i32
    %c0_i32_1 = arith.constant 0 : i32
    %c0_i32_2 = arith.constant 0 : i32
    return %arg0, %c0_i32, %c0_i32_0, %c0_i32_1 : i32, i32, i32, i32
  }
  func.func @transform_1(%arg0: i32) -> (i32, i32, i32) {
    %c0_i32 = arith.constant 0 : i32
    %c0_i32_0 = arith.constant 0 : i32
    %c0_i32_1 = arith.constant 0 : i32
    return %arg0, %c0_i32, %c0_i32_0 : i32, i32, i32
  }
}

module attributes {stable_mosaic.version = 11 : i64} {
  func.func @_convK_stats_kernel(%arg0: i32, %arg1: i32, %arg2: memref<128x128xbf16, #tpu.memory_space<vmem>>, %arg3: memref<128x128xbf16, #tpu.memory_space<vmem>>, %arg4: memref<128x128xbf16, #tpu.memory_space<vmem>>, %arg5: memref<8x128xf32, #tpu.memory_space<vmem>>, %arg6: memref<8x128xf32, #tpu.memory_space<vmem>>) attributes {dimension_semantics = [#tpu.dimension_semantics<parallel>, #tpu.dimension_semantics<parallel>], iteration_bounds = array<i64: 1, 1>, scalar_prefetch = 0 : i64, scratch_operands = 0 : i64, tpu.core_type = #tpu.core_type<tc>, window_params = [{transform_indices = @transform_0, window_bounds = array<i64: 128, 128>}, {transform_indices = @transform_1, window_bounds = array<i64: 128, 128>}, {transform_indices = @transform_2, window_bounds = array<i64: 128, 128>}, {transform_indices = @transform_3, window_bounds = array<i64: 8, 128>}, {transform_indices = @transform_4, window_bounds = array<i64: 8, 128>}]} {
    %c0 = arith.constant 0 : index
    %c0_0 = arith.constant 0 : index
    %0 = vector.load %arg2[%c0, %c0_0] : memref<128x128xbf16, #tpu.memory_space<vmem>>, vector<128x128xbf16>
    %c0_1 = arith.constant 0 : index
    %c0_2 = arith.constant 0 : index
    %1 = vector.load %arg3[%c0_1, %c0_2] : memref<128x128xbf16, #tpu.memory_space<vmem>>, vector<128x128xbf16>
    %cst = arith.constant dense<0.000000e+00> : vector<128x128xf32>
    %2 = tpu.matmul %0, %1, %cst {dimension_numbers = #tpu.dot_dimension_numbers<[1], [0], [0], [1], [0, 0, 1, 1], [], []>} : vector<128x128xbf16>, vector<128x128xbf16>, vector<128x128xf32> -> vector<128x128xf32>
    %3 = arith.truncf %2 : vector<128x128xf32> to vector<128x128xbf16>
    %c0_3 = arith.constant 0 : index
    %c0_4 = arith.constant 0 : index
    %4 = vector.load %arg4[%c0_3, %c0_4] : memref<128x128xbf16, #tpu.memory_space<vmem>>, vector<128x128xbf16>
    tpu.vector_store %arg4[%c0_3, %c0_4], %3 {strides = array<i32>} : memref<128x128xbf16, #tpu.memory_space<vmem>>, vector<128x128xbf16>,
    %cst_5 = arith.constant dense<0.000000e+00> : vector<128xf32>
    %5 = vector.multi_reduction <add>, %2, %cst_5 [0] : vector<128x128xf32> to vector<128xf32>
    %6 = vector.shape_cast %5 : vector<128xf32> to vector<1x128xf32>
    %7 = arith.mulf %2, %2 : vector<128x128xf32>
    %cst_6 = arith.constant dense<0.000000e+00> : vector<128xf32>
    %8 = vector.multi_reduction <add>, %7, %cst_6 [0] : vector<128x128xf32> to vector<128xf32>
    %9 = vector.shape_cast %8 : vector<128xf32> to vector<1x128xf32>
    %10 = vector.shape_cast %6 : vector<1x128xf32> to vector<1x128xf32>
    %11 = vector.broadcast %10 : vector<1x128xf32> to vector<8x128xf32>
    %c0_7 = arith.constant 0 : index
    %c0_8 = arith.constant 0 : index
    %12 = vector.load %arg5[%c0_7, %c0_8] : memref<8x128xf32, #tpu.memory_space<vmem>>, vector<8x128xf32>
    tpu.vector_store %arg5[%c0_7, %c0_8], %11 {strides = array<i32>} : memref<8x128xf32, #tpu.memory_space<vmem>>, vector<8x128xf32>,
    %13 = vector.shape_cast %9 : vector<1x128xf32> to vector<1x128xf32>
    %14 = vector.broadcast %13 : vector<1x128xf32> to vector<8x128xf32>
    %c0_9 = arith.constant 0 : index
    %c0_10 = arith.constant 0 : index
    %15 = vector.load %arg6[%c0_9, %c0_10] : memref<8x128xf32, #tpu.memory_space<vmem>>, vector<8x128xf32>
    tpu.vector_store %arg6[%c0_9, %c0_10], %14 {strides = array<i32>} : memref<8x128xf32, #tpu.memory_space<vmem>>, vector<8x128xf32>,
    return
  }
  func.func @transform_0(%arg0: i32, %arg1: i32) -> (i32, i32) {
    %c0_i32 = arith.constant 0 : i32
    %c0_i32_0 = arith.constant 0 : i32
    return %arg0, %c0_i32 : i32, i32
  }
  func.func @transform_1(%arg0: i32, %arg1: i32) -> (i32, i32) {
    %c0_i32 = arith.constant 0 : i32
    %c0_i32_0 = arith.constant 0 : i32
    return %c0_i32, %arg1 : i32, i32
  }
  func.func @transform_2(%arg0: i32, %arg1: i32) -> (i32, i32) {
    %c0_i32 = arith.constant 0 : i32
    return %arg0, %arg1 : i32, i32
  }
  func.func @transform_3(%arg0: i32, %arg1: i32) -> (i32, i32) {
    %c0_i32 = arith.constant 0 : i32
    return %arg0, %arg1 : i32, i32
  }
  func.func @transform_4(%arg0: i32, %arg1: i32) -> (i32, i32) {
    %c0_i32 = arith.constant 0 : i32
    return %arg0, %arg1 : i32, i32
  }
}

module attributes {stable_mosaic.version = 11 : i64} {
  func.func @_bn_relu_kernel(%arg0: i32, %arg1: i32, %arg2: memref<128x128xbf16, #tpu.memory_space<vmem>>, %arg3: memref<1x128xf32, #tpu.memory_space<vmem>>, %arg4: memref<1x128xf32, #tpu.memory_space<vmem>>, %arg5: memref<128x128xf32, #tpu.memory_space<vmem>>) attributes {dimension_semantics = [#tpu.dimension_semantics<parallel>, #tpu.dimension_semantics<parallel>], iteration_bounds = array<i64: 1, 1>, scalar_prefetch = 0 : i64, scratch_operands = 0 : i64, tpu.core_type = #tpu.core_type<tc>, window_params = [{transform_indices = @transform_0, window_bounds = array<i64: 128, 128>}, {transform_indices = @transform_1, window_bounds = array<i64: 1, 128>}, {transform_indices = @transform_2, window_bounds = array<i64: 1, 128>}, {transform_indices = @transform_3, window_bounds = array<i64: 128, 128>}]} {
    %c0 = arith.constant 0 : index
    %c0_0 = arith.constant 0 : index
    %0 = vector.load %arg2[%c0, %c0_0] : memref<128x128xbf16, #tpu.memory_space<vmem>>, vector<128x128xbf16>
    %1 = arith.extf %0 : vector<128x128xbf16> to vector<128x128xf32>
    %c0_1 = arith.constant 0 : index
    %c0_2 = arith.constant 0 : index
    %2 = vector.load %arg3[%c0_1, %c0_2] : memref<1x128xf32, #tpu.memory_space<vmem>>, vector<1x128xf32>
    %3 = vector.broadcast %2 : vector<1x128xf32> to vector<128x128xf32>
    %4 = arith.mulf %1, %3 : vector<128x128xf32>
    %c0_3 = arith.constant 0 : index
    %c0_4 = arith.constant 0 : index
    %5 = vector.load %arg4[%c0_3, %c0_4] : memref<1x128xf32, #tpu.memory_space<vmem>>, vector<1x128xf32>
    %6 = vector.broadcast %5 : vector<1x128xf32> to vector<128x128xf32>
    %7 = arith.addf %4, %6 : vector<128x128xf32>
    %cst = arith.constant 0.000000e+00 : f32
    %8 = vector.broadcast %cst : f32 to vector<128x128xf32>
    %9 = arith.maximumf %7, %8 : vector<128x128xf32>
    %c0_5 = arith.constant 0 : index
    %c0_6 = arith.constant 0 : index
    %10 = vector.load %arg5[%c0_5, %c0_6] : memref<128x128xf32, #tpu.memory_space<vmem>>, vector<128x128xf32>
    tpu.vector_store %arg5[%c0_5, %c0_6], %9 {strides = array<i32>} : memref<128x128xf32, #tpu.memory_space<vmem>>, vector<128x128xf32>,
    return
  }
  func.func @transform_0(%arg0: i32, %arg1: i32) -> (i32, i32) {
    %c0_i32 = arith.constant 0 : i32
    return %arg0, %arg1 : i32, i32
  }
  func.func @transform_1(%arg0: i32, %arg1: i32) -> (i32, i32) {
    %c0_i32 = arith.constant 0 : i32
    %c0_i32_0 = arith.constant 0 : i32
    return %c0_i32, %arg1 : i32, i32
  }
  func.func @transform_2(%arg0: i32, %arg1: i32) -> (i32, i32) {
    %c0_i32 = arith.constant 0 : i32
    %c0_i32_0 = arith.constant 0 : i32
    return %c0_i32, %arg1 : i32, i32
  }
  func.func @transform_3(%arg0: i32, %arg1: i32) -> (i32, i32) {
    %c0_i32 = arith.constant 0 : i32
    return %arg0, %arg1 : i32, i32
  }
}

</mosaic_0001>

<bundles_post_ra>
// kernel: down_forward.5
= control target key start
LH: loop header
LB: loop body
LE: loop exit
PB: predicated region body
PF: predicated region fallthrough
CT: control target
= control target key end

     0   :  { %s670_s1 = inlined_call_operand.vmem [shape: bf16[128,128], index: 1, kind: input, shape index: {}]   ;;  %s671_s0 = inlined_call_operand.vmem [shape: bf16[128,128], index: 0, kind: input, shape index: {}]   ;;  %s672_s2 = inlined_call_operand.vmem [shape: bf16[128,128], index: 2, kind: output, shape index: {0}]   ;;  %s673_s3 = inlined_call_operand.vmem [shape: f32[8,128], index: 3, kind: output, shape index: {1}]   ;;  %s674_s4 = inlined_call_operand.vmem [shape: f32[8,128], index: 4, kind: output, shape index: {2}]  }
   0x1   :  { %v551_v0 = vld [vmem:[%s670_s1] sm:$0xff]   ;;  %v552_v1 = vld [vmem:[%s670_s1 + $0x8] sm:$0xff]   ;;  %v553_v2 = vld [vmem:[%s670_s1 + $0x10] sm:$0xff]  }
   0x2   :  { %503 = vmatprep.subr.bf16.mxu0 %v551_v0  ;;  %535 = vmatprep.subr.bf16.mxu1 %v551_v0  ;;  %v554_v3 = vld [vmem:[%s670_s1 + $0x18] sm:$0xff]   ;;  %v559_v4 = vld [vmem:[%s671_s0] sm:$0xff]   ;;  %v556_v7 = vld [vmem:[%s670_s1 + $0x28] sm:$0xff]  }
   0x3   :  { %504 = vmatpush3.bf16.msra.mxu0 %v551_v0  ;;  %543 = vmatpush3.bf16.msra.mxu1 %v551_v0  ;;  %v555_v5 = vld [vmem:[%s670_s1 + $0x20] sm:$0xff]   ;;  %v557_v8 = vld [vmem:[%s670_s1 + $0x30] sm:$0xff]   ;;  %v558_v9 = vld [vmem:[%s670_s1 + $0x38] sm:$0xff]  }
   0x4   :  { %505 = vmatprep.subr.bf16.mxu0 %v552_v1  ;;  %536 = vmatprep.subr.bf16.mxu1 %v552_v1  ;;  %v563_v6 = vld [vmem:[%s671_s0 + $0x20] sm:$0xff]   ;;  %v560_v10 = vld [vmem:[%s671_s0 + $0x8] sm:$0xff]   ;;  %v561_v12 = vld [vmem:[%s671_s0 + $0x10] sm:$0xff]  }
   0x5   :  { %519 = vmatprep.mubr.bf16.mxu0 %v559_v4  ;;  %527 = vmatprep.mubr.bf16.mxu1 %v563_v6  ;;  %v564_v11 = vld [vmem:[%s671_s0 + $0x28] sm:$0xff]   ;;  %v565_v13 = vld [vmem:[%s671_s0 + $0x30] sm:$0xff]   ;;  %v562_v14 = vld [vmem:[%s671_s0 + $0x18] sm:$0xff]  }
   0x6   :  { %v566_v15 = vld [vmem:[%s671_s0 + $0x38] sm:$0xff]  }
   0x7   :  { %506 = vmatpush3.bf16.msra.mxu0 %v552_v1  ;;  %544 = vmatpush3.bf16.msra.mxu1 %v552_v1 }
   0x8   :  { %507 = vmatprep.subr.bf16.mxu0 %v553_v2  ;;  %537 = vmatprep.subr.bf16.mxu1 %v553_v2 }
   0xb   :  { %508 = vmatpush3.bf16.msra.mxu0 %v553_v2  ;;  %545 = vmatpush3.bf16.msra.mxu1 %v553_v2 }
   0xc   :  { %509 = vmatprep.subr.bf16.mxu0 %v554_v3  ;;  %538 = vmatprep.subr.bf16.mxu1 %v554_v3 }
   0xf   :  { %510 = vmatpush3.bf16.msra.mxu0 %v554_v3  ;;  %546 = vmatpush3.bf16.msra.mxu1 %v554_v3 }
  0x10   :  { %511 = vmatprep.subr.bf16.mxu0 %v555_v5  ;;  %539 = vmatprep.subr.bf16.mxu1 %v555_v5 }
  0x13   :  { %512 = vmatpush3.bf16.msra.mxu0 %v555_v5  ;;  %547 = vmatpush3.bf16.msra.mxu1 %v555_v5 }
  0x14   :  { %513 = vmatprep.subr.bf16.mxu0 %v556_v7  ;;  %540 = vmatprep.subr.bf16.mxu1 %v556_v7 }
  0x17   :  { %514 = vmatpush3.bf16.msra.mxu0 %v556_v7  ;;  %548 = vmatpush3.bf16.msra.mxu1 %v556_v7 }
  0x18   :  { %515 = vmatprep.subr.bf16.mxu0 %v557_v8  ;;  %541 = vmatprep.subr.bf16.mxu1 %v557_v8 }
  0x1b   :  { %516 = vmatpush3.bf16.msra.mxu0 %v557_v8  ;;  %549 = vmatpush3.bf16.msra.mxu1 %v557_v8 }
  0x1c   :  { %517 = vmatprep.subr.bf16.mxu0 %v558_v9  ;;  %542 = vmatprep.subr.bf16.mxu1 %v558_v9 }
  0x1f   :  { %518 = vmatpush3.bf16.msra.mxu0 %v558_v9  ;;  %550 = vmatpush3.bf16.msra.mxu1 %v558_v9 }
  0x22   :  { %520 = vmatmul.mubr.bf16.vlgmr.msra.gmra.mrb[0].mxu0 %v560_v10  ;;  %528 = vmatmul.mubr.bf16.vlgmr.msra.gmra.mrb[0].mxu1 %v564_v11 }
  0x23   :  { %523 = vmatprep.mubr.bf16.mxu0 %v561_v12  ;;  %531 = vmatprep.mubr.bf16.mxu1 %v565_v13 }
  0x2a   :  { %524 = vmatmul.mubr.bf16.gmra.mrb[4].mxu0 %v562_v14  ;;  %532 = vmatmul.mubr.bf16.gmra.mrb[4].mxu1 %v566_v15 }
  0xf5   :  { %v521_v16 = vpop.f32.mrb[0].mxu0  ;;  %v529_v17 = vpop.f32.mrb[0].mxu1 }
  0xf6   :  { %v177_v18 = vpop.f32.mrb[1].mxu0  ;;  %v209_v19 = vpop.f32.mrb[1].mxu1  ;;  %v343_v31 = vmul.f32 %v521_v16, %v521_v16  ;;  %v351_v3 = vmul.f32 %v529_v17, %v529_v17 }
  0xf7   :  { %v522_v20 = vpop.f32.mrb[2].mxu0  ;;  %v530_v21 = vpop.f32.mrb[2].mxu1  ;;  %v341_v22 = vmul.f32 %v177_v18, %v177_v18  ;;  %v349_v61 = vmul.f32 %v209_v19, %v209_v19 }
  0xf8   :  { %v448_v23 = vpack.c.bf16 %v522_v20, %v521_v16  ;;  %v180_v24 = vpop.f32.mrb[3].mxu0  ;;  %v468_v25 = vpack.c.bf16 %v530_v21, %v529_v17  ;;  %v212_v26 = vpop.f32.mrb[3].mxu1  ;;  %v344_v34 = vmul.f32 %v522_v20, %v522_v20  ;;  %v352_v6 = vmul.f32 %v530_v21, %v530_v21 }
  0xf9   :  { %v443_v27 = vpack.c.bf16 %v180_v24, %v177_v18  ;;  %v320_v28 = vadd.f32 %v180_v24, %v177_v18  ;;  %v342_v29 = vmul.f32 %v180_v24, %v180_v24  ;;  %v463_v30 = vpack.c.bf16 %v212_v26, %v209_v19 }
  0xfa   :  { %480 = vst [vmem:[%s672_s2 + $0x8] sm:$0xff] %v448_v23   ;;  %484 = vst [vmem:[%s672_s2 + $0x28] sm:$0xff] %v468_v25   ;;  %v350_v2 = vmul.f32 %v212_v26, %v212_v26 }
  0xfb   :  { %444 = vst [vmem:[%s672_s2] sm:$0xff] %v443_v27   ;;  %v321_v32 = vadd.f32 %v521_v16, %v320_v28  ;;  %v357_v33 = vadd.f32 %v342_v29, %v341_v22  ;;  %483 = vst [vmem:[%s672_s2 + $0x20] sm:$0xff] %v463_v30  }
  0xfd   :  { %v358_v35 = vadd.f32 %v357_v33, %v343_v31  ;;  %v525_v36 = vpop.f32.mrb[4].mxu0  ;;  %v322_v37 = vadd.f32 %v522_v20, %v321_v32  ;;  %v533_v38 = vpop.f32.mrb[4].mxu1 }
  0xfe   :  { %v193_v39 = vpop.f32.mrb[5].mxu0  ;;  %v225_v40 = vpop.f32.mrb[5].mxu1  ;;  %v347_v55 = vmul.f32 %v525_v36, %v525_v36  ;;  %v355_v15 = vmul.f32 %v533_v38, %v533_v38 }
  0xff   :  { %v323_v41 = vadd.f32 %v322_v37, %v193_v39  ;;  %v345_v42 = vmul.f32 %v193_v39, %v193_v39  ;;  %v359_v43 = vadd.f32 %v358_v35, %v344_v34  ;;  %v526_v44 = vpop.f32.mrb[6].mxu0  ;;  %v534_v45 = vpop.f32.mrb[6].mxu1  ;;  %v353_v9 = vmul.f32 %v225_v40, %v225_v40 }
 0x100   :  { %v458_v46 = vpack.c.bf16 %v526_v44, %v525_v36  ;;  %v196_v47 = vpop.f32.mrb[7].mxu0  ;;  %v478_v48 = vpack.c.bf16 %v534_v45, %v533_v38  ;;  %v228_v49 = vpop.f32.mrb[7].mxu1  ;;  %v348_v58 = vmul.f32 %v526_v44, %v526_v44 }
 0x101   :  { %v360_v50 = vadd.f32 %v359_v43, %v345_v42  ;;  %v453_v51 = vpack.c.bf16 %v196_v47, %v193_v39  ;;  %v324_v52 = vadd.f32 %v323_v41, %v196_v47  ;;  %v346_v53 = vmul.f32 %v196_v47, %v196_v47 }
 0x102   :  { %482 = vst [vmem:[%s672_s2 + $0x18] sm:$0xff] %v458_v46   ;;  %486 = vst [vmem:[%s672_s2 + $0x38] sm:$0xff] %v478_v48   ;;  %v473_v54 = vpack.c.bf16 %v228_v49, %v225_v40  ;;  %v354_v14 = vmul.f32 %v228_v49, %v228_v49 }
 0x103   :  { %481 = vst [vmem:[%s672_s2 + $0x10] sm:$0xff] %v453_v51   ;;  %v325_v56 = vadd.f32 %v525_v36, %v324_v52  ;;  %v361_v57 = vadd.f32 %v360_v50, %v346_v53 }
 0x104   :  { %485 = vst [vmem:[%s672_s2 + $0x30] sm:$0xff] %v473_v54  }
 0x105   :  { %v362_v59 = vadd.f32 %v361_v57, %v347_v55  ;;  %v326_v60 = vadd.f32 %v526_v44, %v325_v56 }
 0x107   :  { %v327_v62 = vadd.f32 %v326_v60, %v209_v19  ;;  %v363_v63 = vadd.f32 %v362_v59, %v348_v58  ;;  %v356_v19 = vmul.f32 %v534_v45, %v534_v45 }
 0x109   :  { %v364_v0 = vadd.f32 %v363_v63, %v349_v61  ;;  %v328_v1 = vadd.f32 %v327_v62, %v212_v26 }
 0x10b   :  { %v329_v4 = vadd.f32 %v529_v17, %v328_v1  ;;  %v365_v5 = vadd.f32 %v364_v0, %v350_v2 }
 0x10d   :  { %v366_v7 = vadd.f32 %v365_v5, %v351_v3  ;;  %v330_v8 = vadd.f32 %v530_v21, %v329_v4 }
 0x10f   :  { %v331_v10 = vadd.f32 %v330_v8, %v225_v40  ;;  %v367_v11 = vadd.f32 %v366_v7, %v352_v6 }
 0x111   :  { %v368_v12 = vadd.f32 %v367_v11, %v353_v9  ;;  %v332_v13 = vadd.f32 %v331_v10, %v228_v49 }
 0x113   :  { %v333_v16 = vadd.f32 %v533_v38, %v332_v13  ;;  %v369_v18 = vadd.f32 %v368_v12, %v354_v14 }
 0x115   :  { %v334_v20 = vadd.f32 %v534_v45, %v333_v16  ;;  %v370_v22 = vadd.f32 %v369_v18, %v355_v15 }
 0x117   :  { %v335_v23 = vrot.slane %v334_v20, 4  ;;  %v371_v24 = vadd.f32 %v370_v22, %v356_v19 }
 0x119   :  { %v336_v25 = vadd.f32 %v335_v23, %v334_v20  ;;  %v372_v17 = vrot.slane %v371_v24, 4 }
 0x11b   :  { %v337_v26 = vrot.slane %v336_v25, 2  ;;  %v373_v27 = vadd.f32 %v372_v17, %v371_v24 }
 0x11d   :  { %v338_v28 = vadd.f32 %v337_v26, %v336_v25  ;;  %v374_v21 = vrot.slane %v373_v27, 2 }
 0x11f   :  { %v339_v29 = vrot.slane %v338_v28, 1  ;;  %v375_v30 = vadd.f32 %v374_v21, %v373_v27 }
 0x121   :  { %v340_v31 = vadd.f32 %v339_v29, %v338_v28  ;;  %v376_v32 = vrot.slane %v375_v30, 1 }
 0x123   :  { %v377_v33 = vadd.f32 %v376_v32, %v375_v30  ;;  %378 = vst [vmem:[%s673_s3] sm:$0xff] %v340_v31 }
 0x125   :  { %379 = vst [vmem:[%s674_s4] sm:$0xff] %v377_v33 }

// kernel: down_forward.4
= control target key start
LH: loop header
LB: loop body
LE: loop exit
PB: predicated region body
PF: predicated region fallthrough
CT: control target
= control target key end

     0   :  { %s389_s0 = inlined_call_operand.vmem [shape: bf16[16,2,8,256], index: 0, kind: input, shape index: {}]   ;;  %s390_s1 = inlined_call_operand.vmem [shape: bf16[16,8,128], index: 1, kind: output, shape index: {}]  }
   0x1   :  { %v8_v0 = vld [vmem:[%s389_s0] sm:$0xff]  ;;  %v9_v1 = vld [vmem:[%s389_s0 + $0x8] sm:$0xff]  ;;  %v10_v2 = vld [vmem:[%s389_s0 + $0x10] sm:$0xff] }
   0x2   :  { %v11_v3 = vld [vmem:[%s389_s0 + $0x18] sm:$0xff]  ;;  %v56_v4 = vrot.slane %v8_v0, 4  ;;  %v57_v5 = vrot.slane %v10_v2, 4  ;;  %v104_v6 = vrot.slane %v9_v1, 4  ;;  %v12_v7 = vld [vmem:[%s389_s0 + $0x20] sm:$0xff]  ;;  %v13_v8 = vld [vmem:[%s389_s0 + $0x28] sm:$0xff] }
   0x3   :  { %v105_v9 = vrot.slane %v11_v3, 4  ;;  %v14_v10 = vld [vmem:[%s389_s0 + $0x30] sm:$0xff]  ;;  %v15_v11 = vld [vmem:[%s389_s0 + $0x38] sm:$0xff]  ;;  %v58_v12 = vrot.slane %v12_v7, 4  ;;  %v106_v13 = vrot.slane %v13_v8, 4  ;;  %v16_v14 = vld [vmem:[%s389_s0 + $0x40] sm:$0xff] }
   0x4   :  { %v136_v15 = vmax.bf16 %v56_v4, %v8_v0  ;;  %v137_v16 = vmax.bf16 %v57_v5, %v10_v2  ;;  %v152_v17 = vmax.bf16 %v104_v6, %v9_v1  ;;  %v59_v18 = vrot.slane %v14_v10, 4  ;;  %v17_v19 = vld [vmem:[%s389_s0 + $0x48] sm:$0xff]  ;;  %v18_v20 = vld [vmem:[%s389_s0 + $0x50] sm:$0xff]  ;;  %v19_v25 = vld [vmem:[%s389_s0 + $0x58] sm:$0xff] }
   0x5   :  { %v153_v21 = vmax.bf16 %v105_v9, %v11_v3  ;;  %v107_v22 = vrot.slane %v15_v11, 4  ;;  %v138_v23 = vmax.bf16 %v58_v12, %v12_v7  ;;  %v154_v24 = vmax.bf16 %v106_v13, %v13_v8  ;;  %v20_v26 = vld [vmem:[%s389_s0 + $0x60] sm:$0xff]  ;;  %v22_v31 = vld [vmem:[%s389_s0 + $0x70] sm:$0xff]  ;;  %v21_v36 = vld [vmem:[%s389_s0 + $0x68] sm:$0xff] }
   0x6   :  { %v168_v27 = vmax.bf16 %v152_v17, %v136_v15  ;;  %v139_v28 = vmax.bf16 %v59_v18, %v14_v10  ;;  %v60_v29 = vrot.slane %v16_v14, 4  ;;  %v61_v30 = vrot.slane %v18_v20, 4  ;;  %v23_v37 = vld [vmem:[%s389_s0 + $0x78] sm:$0xff]  ;;  %v24_v42 = vld [vmem:[%s389_s0 + $0x80] sm:$0xff]  ;;  %v26_v47 = vld [vmem:[%s389_s0 + $0x90] sm:$0xff] }
   0x7   :  { %v169_v32 = vmax.bf16 %v153_v21, %v137_v16  ;;  %v155_v33 = vmax.bf16 %v107_v22, %v15_v11  ;;  %v170_v34 = vmax.bf16 %v154_v24, %v138_v23  ;;  %v108_v35 = vrot.slane %v17_v19, 4  ;;  %v25_v52 = vld [vmem:[%s389_s0 + $0x88] sm:$0xff]  ;;  %v27_v53 = vld [vmem:[%s389_s0 + $0x98] sm:$0xff]  ;;  %v28_v54 = vld [vmem:[%s389_s0 + $0xa0] sm:$0xff] }
   0x8   :  { %v109_v38 = vrot.slane %v19_v25, 4  ;;  %v140_v39 = vmax.bf16 %v60_v29, %v16_v14  ;;  %v141_v40 = vmax.bf16 %v61_v30, %v18_v20  ;;  %v62_v41 = vrot.slane %v20_v26, 4  ;;  %v29_v63 = vld [vmem:[%s389_s0 + $0xa8] sm:$0xff]  ;;  %v30_v0 = vld [vmem:[%s389_s0 + $0xb0] sm:$0xff]  ;;  %v31_v4 = vld [vmem:[%s389_s0 + $0xb8] sm:$0xff] }
   0x9   :  { %v244_v43 = vcombine.low %v168_v27, %v169_v32  ;;  %v171_v44 = vmax.bf16 %v155_v33, %v139_v28  ;;  %v156_v45 = vmax.bf16 %v108_v35, %v17_v19  ;;  %v63_v46 = vrot.slane %v22_v31, 4  ;;  %v32_v6 = vld [vmem:[%s389_s0 + $0xc0] sm:$0xff]  ;;  %v33_v15 = vld [vmem:[%s389_s0 + $0xc8] sm:$0xff]  ;;  %v34_v16 = vld [vmem:[%s389_s0 + $0xd0] sm:$0xff] }
   0xa   :  { %v157_v48 = vmax.bf16 %v109_v38, %v19_v25  ;;  %v110_v49 = vrot.slane %v21_v36, 4  ;;  %v111_v50 = vrot.slane %v23_v37, 4  ;;  %v142_v51 = vmax.bf16 %v62_v41, %v20_v26  ;;  %v35_v17 = vld [vmem:[%s389_s0 + $0xd8] sm:$0xff]  ;;  %v36_v22 = vld [vmem:[%s389_s0 + $0xe0] sm:$0xff]  ;;  %v38_v32 = vld [vmem:[%s389_s0 + $0xf0] sm:$0xff] }
   0xb   :  { %208 = vst [vmem:[%s390_s1] sm:$0xff] %v244_v43   ;;  %v245_v55 = vcombine.low %v170_v34, %v171_v44  ;;  %v172_v56 = vmax.bf16 %v156_v45, %v140_v39  ;;  %v143_v57 = vmax.bf16 %v63_v46, %v22_v31  ;;  %v64_v58 = vrot.slane %v24_v42, 4  ;;  %v37_v31 = vld [vmem:[%s389_s0 + $0xe8] sm:$0xff]  ;;  %v39_v33 = vld [vmem:[%s389_s0 + $0xf8] sm:$0xff] }
   0xc   :  { %v173_v59 = vmax.bf16 %v157_v48, %v141_v40  ;;  %v158_v60 = vmax.bf16 %v110_v49, %v21_v36  ;;  %v159_v61 = vmax.bf16 %v111_v50, %v23_v37  ;;  %v65_v62 = vrot.slane %v26_v47, 4 }
   0xd   :  { %246 = vst [vmem:[%s390_s1 + $0x8] sm:$0xff] %v245_v55   ;;  %v112_v1 = vrot.slane %v25_v52, 4  ;;  %v113_v2 = vrot.slane %v27_v53, 4  ;;  %v144_v3 = vmax.bf16 %v64_v58, %v24_v42  ;;  %v66_v5 = vrot.slane %v28_v54, 4 }
   0xe   :  { %v247_v7 = vcombine.low %v172_v56, %v173_v59  ;;  %v174_v8 = vmax.bf16 %v158_v60, %v142_v51  ;;  %v175_v9 = vmax.bf16 %v159_v61, %v143_v57  ;;  %v145_v10 = vmax.bf16 %v65_v62, %v26_v47 }
   0xf   :  { %v160_v11 = vmax.bf16 %v112_v1, %v25_v52  ;;  %v161_v12 = vmax.bf16 %v113_v2, %v27_v53  ;;  %v67_v13 = vrot.slane %v30_v0, 4  ;;  %v114_v14 = vrot.slane %v29_v63, 4 }
  0x10   :  { %248 = vst [vmem:[%s390_s1 + $0x10] sm:$0xff] %v247_v7   ;;  %v249_v18 = vcombine.low %v174_v8, %v175_v9  ;;  %v115_v19 = vrot.slane %v31_v4, 4  ;;  %v146_v20 = vmax.bf16 %v66_v5, %v28_v54  ;;  %v68_v21 = vrot.slane %v32_v6, 4 }
  0x11   :  { %v176_v23 = vmax.bf16 %v160_v11, %v144_v3  ;;  %v177_v24 = vmax.bf16 %v161_v12, %v145_v10  ;;  %v147_v25 = vmax.bf16 %v67_v13, %v30_v0  ;;  %v162_v26 = vmax.bf16 %v114_v14, %v29_v63 }
  0x12   :  { %250 = vst [vmem:[%s390_s1 + $0x18] sm:$0xff] %v249_v18   ;;  %v163_v27 = vmax.bf16 %v115_v19, %v31_v4  ;;  %v69_v28 = vrot.slane %v34_v16, 4  ;;  %v116_v29 = vrot.slane %v33_v15, 4  ;;  %v117_v30 = vrot.slane %v35_v17, 4 }
  0x13   :  { %v251_v34 = vcombine.low %v176_v23, %v177_v24  ;;  %v178_v35 = vmax.bf16 %v162_v26, %v146_v20  ;;  %v148_v36 = vmax.bf16 %v68_v21, %v32_v6  ;;  %v70_v37 = vrot.slane %v36_v22, 4 }
  0x14   :  { %v179_v38 = vmax.bf16 %v163_v27, %v147_v25  ;;  %v149_v39 = vmax.bf16 %v69_v28, %v34_v16  ;;  %v164_v40 = vmax.bf16 %v116_v29, %v33_v15  ;;  %v165_v41 = vmax.bf16 %v117_v30, %v35_v17 }
  0x15   :  { %252 = vst [vmem:[%s390_s1 + $0x20] sm:$0xff] %v251_v34   ;;  %v71_v42 = vrot.slane %v38_v32, 4  ;;  %v118_v43 = vrot.slane %v37_v31, 4  ;;  %v119_v44 = vrot.slane %v39_v33, 4  ;;  %v150_v45 = vmax.bf16 %v70_v37, %v36_v22 }
  0x16   :  { %v253_v46 = vcombine.low %v178_v35, %v179_v38  ;;  %v180_v47 = vmax.bf16 %v164_v40, %v148_v36  ;;  %v181_v48 = vmax.bf16 %v165_v41, %v149_v39 }
  0x17   :  { %v151_v49 = vmax.bf16 %v71_v42, %v38_v32  ;;  %v166_v50 = vmax.bf16 %v118_v43, %v37_v31  ;;  %v167_v51 = vmax.bf16 %v119_v44, %v39_v33 }
  0x18   :  { %254 = vst [vmem:[%s390_s1 + $0x28] sm:$0xff] %v253_v46   ;;  %v255_v52 = vcombine.low %v180_v47, %v181_v48 }
  0x19   :  { %v182_v53 = vmax.bf16 %v166_v50, %v150_v45  ;;  %v183_v54 = vmax.bf16 %v167_v51, %v151_v49 }
  0x1a   :  { %256 = vst [vmem:[%s390_s1 + $0x30] sm:$0xff] %v255_v52  }
  0x1b   :  { %v257_v55 = vcombine.low %v182_v53, %v183_v54 }
  0x1d   :  { %258 = vst [vmem:[%s390_s1 + $0x38] sm:$0xff] %v257_v55  }

// kernel: down_forward.7
= control target key start
LH: loop header
LB: loop body
LE: loop exit
PB: predicated region body
PF: predicated region fallthrough
CT: control target
= control target key end

     0   :  { %s310_s0 = inlined_call_operand.vmem [shape: bf16[128,128], index: 0, kind: input, shape index: {}]   ;;  %s311_s1 = inlined_call_operand.vmem [shape: f32[1,128], index: 1, kind: input, shape index: {}]   ;;  %s312_s2 = inlined_call_operand.vmem [shape: f32[1,128], index: 2, kind: input, shape index: {}]   ;;  %s313_s3 = inlined_call_operand.hbm [shape: f32[128,128], index: 3, kind: output, shape index: {}]  }
   0x1   :  { %v144_v0 = vld [vmem:[%s310_s0] sm:$0xff]   ;;  %v175_v4 = vld [vmem:[%s310_s0 + $0x8] sm:$0xff]   ;;  %v176_v5 = vld [vmem:[%s310_s0 + $0x10] sm:$0xff]  }
   0x2   :  { %v238_v1 = vld [vmem:[%s311_s1] ss:$0 sm:$0xff]  ;;  %v145_v2 = vunpack.c.l.bf16 %v144_v0  ;;  %v146_v3 = vunpack.c.h.bf16 %v144_v0  ;;  %v177_v6 = vld [vmem:[%s310_s0 + $0x18] sm:$0xff]   ;;  %v149_v8 = vunpack.c.l.bf16 %v175_v4  ;;  %v150_v9 = vunpack.c.h.bf16 %v175_v4 }
   0x3   :  { %v252_v7 = vld [vmem:[%s312_s2] ss:$0 sm:$0xff]  ;;  %v153_v10 = vunpack.c.l.bf16 %v176_v5  ;;  %v154_v11 = vunpack.c.h.bf16 %v176_v5  ;;  %v157_v14 = vunpack.c.l.bf16 %v177_v6  ;;  %v158_v15 = vunpack.c.h.bf16 %v177_v6 }
   0x4   :  { %v54_v12 = vmul.f32 %v145_v2, %v238_v1  ;;  %v55_v13 = vmul.f32 %v146_v3, %v238_v1 }
   0x5   :  { %8 = vsyncpa [#allocation3], 0  ;;  %v56_v16 = vmul.f32 %v149_v8, %v238_v1  ;;  %v57_v17 = vmul.f32 %v150_v9, %v238_v1  ;;  %v58_v18 = vmul.f32 %v153_v10, %v238_v1  ;;  %v59_v19 = vmul.f32 %v154_v11, %v238_v1  ;;  %v178_v28 = vld [vmem:[%s310_s0 + $0x20] sm:$0xff]   ;;  %v179_v33 = vld [vmem:[%s310_s0 + $0x28] sm:$0xff]  }
   0x6   :  { %v77_v20 = vadd.f32 %v252_v7, %v54_v12  ;;  %v78_v21 = vadd.f32 %v252_v7, %v55_v13  ;;  %v60_v22 = vmul.f32 %v157_v14, %v238_v1  ;;  %v61_v23 = vmul.f32 %v158_v15, %v238_v1  ;;  %v180_v34 = vld [vmem:[%s310_s0 + $0x30] sm:$0xff]   ;;  %v181_v39 = vld [vmem:[%s310_s0 + $0x38] sm:$0xff]   ;;  %s209_s0 = smov [#allocation2]  }
   0x7   :  { %v79_v24 = vadd.f32 %v252_v7, %v56_v16  ;;  %v80_v25 = vadd.f32 %v252_v7, %v57_v17  ;;  %v81_v26 = vadd.f32 %v252_v7, %v58_v18  ;;  %v82_v27 = vadd.f32 %v252_v7, %v59_v19  ;;  %s130_s30 = sshll.u32 %s209_s0, 4  ;;  %s131_s30 = int_to_ptr.vmem [resolvable:$true] %s130_s30 }
   0x8   :  { %v93_v29 = vmax.f32 %v77_v20, 0.0  ;;  %v94_v30 = vmax.f32 %v78_v21, 0.0  ;;  %v83_v31 = vadd.f32 %v252_v7, %v60_v22  ;;  %v84_v32 = vadd.f32 %v252_v7, %v61_v23  ;;  %s185_s4 = scalar_lea.vmem %s131_s30, 2048  ;;  %p190_p1 = scmp.lt.s32.totalorder %s131_s30, %s131_s30 }
   0x9   :  { %v95_v35 = vmax.f32 %v79_v24, 0.0  ;;  %v96_v36 = vmax.f32 %v80_v25, 0.0  ;;  %v97_v37 = vmax.f32 %v81_v26, 0.0  ;;  %v98_v38 = vmax.f32 %v82_v27, 0.0  ;;  %p186_p0 = scmp.ne.s32.totalorder %s131_s30, %s185_s4  ;;  %p191_p2 = scmp.lt.s32.totalorder %s185_s4, %s185_s4 }
   0xa   :  { %109 = vst [vmem:[#allocation2] sm:$0xff] %v93_v29  ;;  %110 = vst [vmem:[#allocation2 + $0x8] sm:$0xff] %v94_v30  ;;  %v99_v40 = vmax.f32 %v83_v31, 0.0  ;;  %v100_v41 = vmax.f32 %v84_v32, 0.0  ;;  %v161_v42 = vunpack.c.l.bf16 %v178_v28  ;;  %v162_v43 = vunpack.c.h.bf16 %v178_v28 }
   0xb   :  { %111 = vst [vmem:[#allocation2 + $0x10] sm:$0xff] %v95_v35  ;;  %112 = vst [vmem:[#allocation2 + $0x18] sm:$0xff] %v96_v36  ;;  %v165_v44 = vunpack.c.l.bf16 %v179_v33  ;;  %v166_v45 = vunpack.c.h.bf16 %v179_v33  ;;  %v169_v46 = vunpack.c.l.bf16 %v180_v34  ;;  %v170_v47 = vunpack.c.h.bf16 %v180_v34  ;;  %p192_p3 = por %p191_p2, %p190_p1 }
   0xc   :  { %113 = vst [vmem:[#allocation2 + $0x20] sm:$0xff] %v97_v37  ;;  %114 = vst [vmem:[#allocation2 + $0x28] sm:$0xff] %v98_v38  ;;  %v62_v48 = vmul.f32 %v161_v42, %v238_v1  ;;  %v63_v49 = vmul.f32 %v162_v43, %v238_v1  ;;  %v173_v50 = vunpack.c.l.bf16 %v181_v39  ;;  %v174_v51 = vunpack.c.h.bf16 %v181_v39 }
   0xd   :  { %115 = vst [vmem:[#allocation2 + $0x30] sm:$0xff] %v99_v40  ;;  %116 = vst [vmem:[#allocation2 + $0x38] sm:$0xff] %v100_v41  ;;  %v64_v52 = vmul.f32 %v165_v44, %v238_v1  ;;  %v65_v53 = vmul.f32 %v166_v45, %v238_v1  ;;  %v66_v54 = vmul.f32 %v169_v46, %v238_v1  ;;  %p193_p4 = pnand %p192_p3, %p186_p0 }
   0xe   :  { %v67_v55 = vmul.f32 %v170_v47, %v238_v1  ;;  %v85_v56 = vadd.f32 %v252_v7, %v62_v48  ;;  %v86_v57 = vadd.f32 %v252_v7, %v63_v49  ;;  %v68_v58 = vmul.f32 %v173_v50, %v238_v1 }
   0xf   :  { %v69_v59 = vmul.f32 %v174_v51, %v238_v1  ;;  %v87_v60 = vadd.f32 %v252_v7, %v64_v52  ;;  %v88_v61 = vadd.f32 %v252_v7, %v65_v53  ;;  %v89_v62 = vadd.f32 %v252_v7, %v66_v54 }
  0x10   :  { %v90_v63 = vadd.f32 %v252_v7, %v67_v55  ;;  %v101_v0 = vmax.f32 %v85_v56, 0.0  ;;  %v102_v2 = vmax.f32 %v86_v57, 0.0  ;;  %v91_v3 = vadd.f32 %v252_v7, %v68_v58 }
  0x11   :  { %v92_v4 = vadd.f32 %v252_v7, %v69_v59  ;;  %v103_v5 = vmax.f32 %v87_v60, 0.0  ;;  %v104_v6 = vmax.f32 %v88_v61, 0.0  ;;  %v105_v8 = vmax.f32 %v89_v62, 0.0 }
  0x12   :  { %v106_v1 = vmax.f32 %v90_v63, 0.0  ;;  %117 = vst [vmem:[#allocation2 + $0x40] sm:$0xff] %v101_v0  ;;  %118 = vst [vmem:[#allocation2 + $0x48] sm:$0xff] %v102_v2  ;;  %v107_v9 = vmax.f32 %v91_v3, 0.0 }
  0x13   :  { %v108_v10 = vmax.f32 %v92_v4, 0.0  ;;  %119 = vst [vmem:[#allocation2 + $0x50] sm:$0xff] %v103_v5  ;;  %120 = vst [vmem:[#allocation2 + $0x58] sm:$0xff] %v104_v6 }
  0x14   :  { %121 = vst [vmem:[#allocation2 + $0x60] sm:$0xff] %v105_v8  ;;  %122 = vst [vmem:[#allocation2 + $0x68] sm:$0xff] %v106_v1 }
  0x15   :  { %123 = vst [vmem:[#allocation2 + $0x70] sm:$0xff] %v107_v9  ;;  %124 = vst [vmem:[#allocation2 + $0x78] sm:$0xff] %v108_v10 }
  0x16   :  { %196 = shalt.err (!%p193_p4)
}
  0x17   :  { %s197_s7 = scalar_lea.hbm %s313_s3, 2048 }
  0x18   :  { %p198_p5 = scmp.ne.s32.totalorder %s313_s3, %s197_s7  ;;  %p201_p6 = scmp.lt.u32.totalorder %s197_s7, %s313_s3 }
  0x1a   :  { %p203_p7 = pnand %p201_p6, %p198_p5 }
  0x1c   :  { %206 = shalt.err (!%p203_p7)
}
  0x1d   :  { %s210_s12 = smov 128   ;;  %s211_s13 = smov 8  }
  0x1e   :  { %136 = dma.vmem_to_hbm [thread:$0]  %s131_s30, 2048, %s313_s3, [#allocation3], %s210_s12, %s210_s12, %s211_s13  }
  0x1f   :  { %207 = dma.done.wait [#allocation3], 2048  }
  0x20   :  { %208 = vsyncadd [#allocation3], 4294965248 }
  0x21   :  { %140 = vsyncpa [#allocation3], 1 }

</bundles_post_ra>
